<compile_context>
chip_gen: v5e
topology: v5e:2x2
jax: 0.10.0
libtpu: 0.0.40
codegen_flags: <defaults>
</compile_context>

<pallas_src>
import functools

import jax
import jax.numpy as jnp
from jax.experimental import pallas as pl
from jax.experimental.pallas import tpu as pltpu


def _round_up(v, m):
    return (v + m - 1) // m * m


def _edgeconv_kernel(tab_ref, idx_i_ref, idx_j_ref, b_ref, out_ref, *, n):
    """Fused EdgeConv tile.

    tab_ref   : (1, Rpad, Cpad)  gather-dtype  [P ; Q ; zero-pad] per batch
    idx_i_ref : (1, TN, K)       i32  edge_index[1] tile (rows of P)
    idx_j_ref : (1, TN, K)       i32  edge_index[0] tile (rows of Q)
    b_ref     : (1, Cpad)        f32  bias (zero-padded)
    out_ref   : (1, TN, Cpad)    f32
    """
    tab = tab_ref[0]                                   # (Rpad, Cpad)
    idx_i = idx_i_ref[0]                               # (TN, K) -> rows [0, N)
    idx_j = idx_j_ref[0] + n                           # (TN, K) -> rows [N, 2N)
    tn, k_nbrs = idx_i.shape
    rpad = tab.shape[0]
    cpad = out_ref.shape[2]
    gdtype = tab.dtype

    col = jax.lax.broadcasted_iota(jnp.int32, (tn, rpad), 1)   # hoisted

    # Running max of (P[i] + Q[j]) over neighbours.  Bias/ReLU applied after
    # the loop, so a large-negative finite init is safe (no -inf semantics).
    acc = jnp.full((tn, cpad), jnp.finfo(jnp.float32).min, dtype=jnp.float32)

    # K is small and static -> unrolled Python loop.  Each step: one fused
    # (TN, Rpad) x (Rpad, Cpad) MXU gather that returns P[idx_i] + Q[idx_j].
    # NOTE: an out-of-range index produces an all-zero selection row for that
    # slot (silent divergence from gather semantics on malformed input).
    for k in range(k_nbrs):
        cond = (col == idx_i[:, k:k + 1]) | (col == idx_j[:, k:k + 1])
        sel = jnp.where(cond, 1.0, 0.0).astype(gdtype)          # (TN, Rpad)
        v = jnp.dot(sel, tab, preferred_element_type=jnp.float32)
        acc = jnp.maximum(acc, v)

    # conv bias (exact f32) + ReLU once:  max_k relu(v_k + b) == relu(max_k v_k + b)
    out_ref[0] = jnp.maximum(acc + b_ref[...], 0.0)             # lane-dense store


@functools.partial(jax.jit, static_argnames=("tn", "gather_dtype"))
def edge_conv2d(x, edge_index, weight, bias, y=None, *, tn=None,
                gather_dtype=jnp.bfloat16):
    """EdgeConv2d forward.

    x          : (B, C, N, 1) f32
    edge_index : (2, B, N, K) int32
    weight     : (Cout, 2C)   f32  (Conv2d 1x1 weight squeezed)
    bias       : (Cout,)      f32
    y          : optional (B, C, N, 1) source for x_j
    returns    : (B, Cout, N, 1) f32
    """
    B, C, N, _ = x.shape
    K = edge_index.shape[-1]
    Cout = weight.shape[0]
    cpad = _round_up(Cout, 128)            # lane-dense output / table width
    rpad = _round_up(2 * N, 8)             # sublane-friendly table height

    if tn is None:
        tn = 256 if N % 256 == 0 else (128 if N % 128 == 0 else N)
    assert N % tn == 0, "N must be divisible by the N-tile size"

    # Channels-last per-vertex slabs: (B, N, C).  Cheap transpose, no K blowup.
    x_bnc = jnp.transpose(x[:, :, :, 0], (0, 2, 1))
    j_src = x_bnc if y is None else jnp.transpose(y[:, :, :, 0], (0, 2, 1))

    # Hoist the 1x1 conv out of K:
    #   Wi @ x_i + Wd @ (x_j - x_i) = (Wi - Wd) @ x_i + Wd @ x_j
    w_i = weight[:, :C]
    w_d = weight[:, C:]
    p = jnp.einsum("bnc,co->bno", x_bnc, (w_i - w_d).T)   # (B, N, Cout) f32
    q = jnp.einsum("bnc,co->bno", j_src, w_d.T)           # (B, N, Cout) f32

    # Fused gather table T = [P ; Q], padded and cast to the gather dtype.
    tab = jnp.concatenate([p, q], axis=1)                 # (B, 2N, Cout)
    tab = jnp.pad(tab, ((0, 0), (0, rpad - 2 * N), (0, cpad - Cout)))
    tab = tab.astype(gather_dtype)                        # (B, Rpad, Cpad)

    b_row = jnp.pad(bias, (0, cpad - Cout)).reshape(1, cpad).astype(jnp.float32)

    idx_i = edge_index[1].astype(jnp.int32)               # (B, N, K)
    idx_j = edge_index[0].astype(jnp.int32)               # (B, N, K)

    # VMEM budget derived from the actual resident (double-buffered) blocks
    # plus in-kernel temporaries, with 2x headroom; clamped to 64 MiB (v7x-safe).
    gbytes = jnp.dtype(gather_dtype).itemsize
    est = (2 * rpad * cpad * gbytes                                   # table
           + 2 * 2 * _round_up(tn, 8) * _round_up(K, 128) * 4         # idx tiles
           + 2 * tn * cpad * 4                                        # out tile
           + 2 * cpad * 4                                             # bias
           + tn * rpad * (4 + 4 + gbytes)                             # col/where/sel
           + 2 * tn * cpad * 4)                                       # acc + v
    vmem_limit = int(max(32 * 1024 * 1024, min(64 * 1024 * 1024, 2 * est)))

    kernel = functools.partial(_edgeconv_kernel, n=N)

    out_pad = pl.pallas_call(
        kernel,
        out_shape=jax.ShapeDtypeStruct((B, N, cpad), jnp.float32),
        grid_spec=pltpu.PrefetchScalarGridSpec(
            num_scalar_prefetch=0,
            grid=(B, N // tn),
            in_specs=[
                # per-batch gather table: block index constant over the N-tile
                # axis -> DMA'd once per batch, resident across tiles.
                pl.BlockSpec((1, rpad, cpad), lambda b, t: (b, 0, 0)),
                pl.BlockSpec((1, tn, K), lambda b, t: (b, t, 0)),
                pl.BlockSpec((1, tn, K), lambda b, t: (b, t, 0)),
                pl.BlockSpec((1, cpad), lambda b, t: (0, 0)),
            ],
            out_specs=pl.BlockSpec((1, tn, cpad), lambda b, t: (b, t, 0)),
        ),
        compiler_params=pltpu.CompilerParams(
            dimension_semantics=("parallel", "parallel"),
            vmem_limit_bytes=vmem_limit,
        ),
    )(tab, idx_i, idx_j, b_row)

    out = out_pad[:, :, :Cout]                                # strip lane padding
    # back to PyTorch NCHW convention: (B, Cout, N, 1)
    return jnp.transpose(out, (0, 2, 1))[..., None]


# --------------------------------------------------------------------------
# Pure-JAX reference (mirrors the PyTorch module directly).
# --------------------------------------------------------------------------
def _batched_index_select(x_bcn, idx_bnk):
    """x_bcn: (B, C, N); idx_bnk: (B, N, K) -> (B, C, N, K)."""
    return jax.vmap(lambda xb, ib: xb[:, ib])(x_bcn, idx_bnk)


def _reference(x, edge_index, weight, bias, y=None):
    x_bcn = x[:, :, :, 0]
    src_j = x_bcn if y is None else y[:, :, :, 0]
    x_i = _batched_index_select(x_bcn, edge_index[1])
    x_j = _batched_index_select(src_j, edge_index[0])
    feat = jnp.concatenate([x_i, x_j - x_i], axis=1)          # (B, 2C, N, K)
    out = jnp.einsum("oc,bcnk->bonk", weight, feat) + bias[None, :, None, None]
    out = jnp.maximum(out, 0.0)
    return jnp.max(out, axis=-1, keepdims=True)               # (B, Cout, N, 1)


if __name__ == "__main__":
    B, C, N, K = 2, 4, 16, 8
    Cout = 8

    key = jax.random.PRNGKey(0)
    k_x, k_y, k_idx0, k_idx1, k_w, k_b = jax.random.split(key, 6)

    x = jax.random.normal(k_x, (B, C, N, 1), dtype=jnp.float32)
    y = jax.random.normal(k_y, (B, C, N, 1), dtype=jnp.float32)
    edge_index = jnp.stack([
        jax.random.randint(k_idx0, (B, N, K), 0, N, dtype=jnp.int32),
        jax.random.randint(k_idx1, (B, N, K), 0, N, dtype=jnp.int32),
    ], axis=0)                                                 # (2, B, N, K)

    # Conv2d(2C, Cout, kernel_size=1, bias=True) parameters (deterministic init)
    weight = (jax.random.normal(k_w, (Cout, 2 * C), dtype=jnp.float32)
              * (1.0 / jnp.sqrt(2.0 * C)))
    bias = jax.random.normal(k_b, (Cout,), dtype=jnp.float32) * 0.1

    # y=None path, tn=8 -> grid=(B, 2): exercises the N-tiling path (bf16 gather).
    out = edge_conv2d(x, edge_index, weight, bias, tn=8)
    out = jax.block_until_ready(out)
    ref = _reference(x, edge_index, weight, bias)
    assert out.shape == (B, Cout, N, 1), out.shape
    assert jnp.allclose(out, ref, atol=2e-2, rtol=2e-2), "mismatch vs reference (y=None)"

    # y != None path (swaps only the x_j source).
    out_y = edge_conv2d(x, edge_index, weight, bias, y, tn=8)
    out_y = jax.block_until_ready(out_y)
    ref_y = _reference(x, edge_index, weight, bias, y)
    assert jnp.allclose(out_y, ref_y, atol=2e-2, rtol=2e-2), "mismatch vs reference (y)"

    # Exact f32 gather path (tight tolerance).
    out_f32 = edge_conv2d(x, edge_index, weight, bias, gather_dtype=jnp.float32)
    out_f32 = jax.block_until_ready(out_f32)
    assert jnp.allclose(out_f32, ref, atol=1e-4, rtol=1e-4), "mismatch vs reference (f32)"

    print("KERNEL_OK")
</pallas_src>

<mosaic_0001>
module attributes {stable_mosaic.version = 11 : i64} {
  func.func @_edgeconv_kernel(%arg0: i32, %arg1: i32, %arg2: memref<1x32x128xbf16, #tpu.memory_space<vmem>>, %arg3: memref<1x8x8xi32, #tpu.memory_space<vmem>>, %arg4: memref<1x8x8xi32, #tpu.memory_space<vmem>>, %arg5: memref<1x128xf32, #tpu.memory_space<vmem>>, %arg6: memref<1x8x128xf32, #tpu.memory_space<vmem>>) attributes {dimension_semantics = [#tpu.dimension_semantics<parallel>, #tpu.dimension_semantics<parallel>], iteration_bounds = array<i64: 2, 2>, scalar_prefetch = 0 : i64, scratch_operands = 0 : i64, tpu.core_type = #tpu.core_type<tc>, window_params = [{transform_indices = @transform_0, window_bounds = array<i64: 1, 32, 128>}, {transform_indices = @transform_1, window_bounds = array<i64: 1, 8, 8>}, {transform_indices = @transform_2, window_bounds = array<i64: 1, 8, 8>}, {pipeline_mode = #tpu.pipeline_mode<synchronous>, transform_indices = @transform_3, window_bounds = array<i64: 1, 128>}, {transform_indices = @transform_4, window_bounds = array<i64: 1, 8, 128>}]} {
    %c0 = arith.constant 0 : index
    %c0_0 = arith.constant 0 : index
    %c0_1 = arith.constant 0 : index
    %0 = vector.load %arg2[%c0, %c0_0, %c0_1] : memref<1x32x128xbf16, #tpu.memory_space<vmem>>, vector<1x32x128xbf16>
    %1 = vector.shape_cast %0 : vector<1x32x128xbf16> to vector<32x128xbf16>
    %c0_2 = arith.constant 0 : index
    %c0_3 = arith.constant 0 : index
    %c0_4 = arith.constant 0 : index
    %2 = vector.load %arg3[%c0_2, %c0_3, %c0_4] : memref<1x8x8xi32, #tpu.memory_space<vmem>>, vector<1x8x8xi32>
    %3 = vector.shape_cast %2 : vector<1x8x8xi32> to vector<8x8xi32>
    %c0_5 = arith.constant 0 : index
    %c0_6 = arith.constant 0 : index
    %c0_7 = arith.constant 0 : index
    %4 = vector.load %arg4[%c0_5, %c0_6, %c0_7] : memref<1x8x8xi32, #tpu.memory_space<vmem>>, vector<1x8x8xi32>
    %5 = vector.shape_cast %4 : vector<1x8x8xi32> to vector<8x8xi32>
    %c16_i32 = arith.constant 16 : i32
    %6 = vector.broadcast %c16_i32 : i32 to vector<8x8xi32>
    %7 = arith.addi %5, %6 : vector<8x8xi32>
    %8 = tpu.iota {dimensions = array<i32: 1>} : vector<8x32xi32>
    %cst = arith.constant -3.40282347E+38 : f32
    %9 = vector.broadcast %cst : f32 to vector<8x128xf32>
    %10 = vector.extract_strided_slice %3 {offsets = [0, 0], sizes = [8, 1], strides = [1, 1]} : vector<8x8xi32> to vector<8x1xi32>
    %11 = vector.broadcast %10 : vector<8x1xi32> to vector<8x32xi32>
    %12 = arith.cmpi eq, %8, %11 : vector<8x32xi32>
    %13 = vector.extract_strided_slice %7 {offsets = [0, 0], sizes = [8, 1], strides = [1, 1]} : vector<8x8xi32> to vector<8x1xi32>
    %14 = vector.broadcast %13 : vector<8x1xi32> to vector<8x32xi32>
    %15 = arith.cmpi eq, %8, %14 : vector<8x32xi32>
    %16 = arith.ori %12, %15 : vector<8x32xi1>
    %cst_8 = arith.constant 1.000000e+00 : f32
    %cst_9 = arith.constant 0.000000e+00 : f32
    %17 = vector.broadcast %cst_8 : f32 to vector<8x32xf32>
    %18 = vector.broadcast %cst_9 : f32 to vector<8x32xf32>
    %19 = arith.select %16, %17, %18 : vector<8x32xi1>, vector<8x32xf32>
    %20 = arith.truncf %19 : vector<8x32xf32> to vector<8x32xbf16>
    %cst_10 = arith.constant dense<0.000000e+00> : vector<8x128xf32>
    %21 = tpu.matmul %20, %1, %cst_10 {dimension_numbers = #tpu.dot_dimension_numbers<[1], [0], [0], [1], [0, 0, 1, 1], [], []>} : vector<8x32xbf16>, vector<32x128xbf16>, vector<8x128xf32> -> vector<8x128xf32>
    %22 = arith.maximumf %9, %21 : vector<8x128xf32>
    %23 = vector.extract_strided_slice %3 {offsets = [0, 1], sizes = [8, 1], strides = [1, 1]} : vector<8x8xi32> to vector<8x1xi32>
    %24 = vector.broadcast %23 : vector<8x1xi32> to vector<8x32xi32>
    %25 = arith.cmpi eq, %8, %24 : vector<8x32xi32>
    %26 = vector.extract_strided_slice %7 {offsets = [0, 1], sizes = [8, 1], strides = [1, 1]} : vector<8x8xi32> to vector<8x1xi32>
    %27 = vector.broadcast %26 : vector<8x1xi32> to vector<8x32xi32>
    %28 = arith.cmpi eq, %8, %27 : vector<8x32xi32>
    %29 = arith.ori %25, %28 : vector<8x32xi1>
    %cst_11 = arith.constant 1.000000e+00 : f32
    %cst_12 = arith.constant 0.000000e+00 : f32
    %30 = vector.broadcast %cst_11 : f32 to vector<8x32xf32>
    %31 = vector.broadcast %cst_12 : f32 to vector<8x32xf32>
    %32 = arith.select %29, %30, %31 : vector<8x32xi1>, vector<8x32xf32>
    %33 = arith.truncf %32 : vector<8x32xf32> to vector<8x32xbf16>
    %cst_13 = arith.constant dense<0.000000e+00> : vector<8x128xf32>
    %34 = tpu.matmul %33, %1, %cst_13 {dimension_numbers = #tpu.dot_dimension_numbers<[1], [0], [0], [1], [0, 0, 1, 1], [], []>} : vector<8x32xbf16>, vector<32x128xbf16>, vector<8x128xf32> -> vector<8x128xf32>
    %35 = arith.maximumf %22, %34 : vector<8x128xf32>
    %36 = vector.extract_strided_slice %3 {offsets = [0, 2], sizes = [8, 1], strides = [1, 1]} : vector<8x8xi32> to vector<8x1xi32>
    %37 = vector.broadcast %36 : vector<8x1xi32> to vector<8x32xi32>
    %38 = arith.cmpi eq, %8, %37 : vector<8x32xi32>
    %39 = vector.extract_strided_slice %7 {offsets = [0, 2], sizes = [8, 1], strides = [1, 1]} : vector<8x8xi32> to vector<8x1xi32>
    %40 = vector.broadcast %39 : vector<8x1xi32> to vector<8x32xi32>
    %41 = arith.cmpi eq, %8, %40 : vector<8x32xi32>
    %42 = arith.ori %38, %41 : vector<8x32xi1>
    %cst_14 = arith.constant 1.000000e+00 : f32
    %cst_15 = arith.constant 0.000000e+00 : f32
    %43 = vector.broadcast %cst_14 : f32 to vector<8x32xf32>
    %44 = vector.broadcast %cst_15 : f32 to vector<8x32xf32>
    %45 = arith.select %42, %43, %44 : vector<8x32xi1>, vector<8x32xf32>
    %46 = arith.truncf %45 : vector<8x32xf32> to vector<8x32xbf16>
    %cst_16 = arith.constant dense<0.000000e+00> : vector<8x128xf32>
    %47 = tpu.matmul %46, %1, %cst_16 {dimension_numbers = #tpu.dot_dimension_numbers<[1], [0], [0], [1], [0, 0, 1, 1], [], []>} : vector<8x32xbf16>, vector<32x128xbf16>, vector<8x128xf32> -> vector<8x128xf32>
    %48 = arith.maximumf %35, %47 : vector<8x128xf32>
    %49 = vector.extract_strided_slice %3 {offsets = [0, 3], sizes = [8, 1], strides = [1, 1]} : vector<8x8xi32> to vector<8x1xi32>
    %50 = vector.broadcast %49 : vector<8x1xi32> to vector<8x32xi32>
    %51 = arith.cmpi eq, %8, %50 : vector<8x32xi32>
    %52 = vector.extract_strided_slice %7 {offsets = [0, 3], sizes = [8, 1], strides = [1, 1]} : vector<8x8xi32> to vector<8x1xi32>
    %53 = vector.broadcast %52 : vector<8x1xi32> to vector<8x32xi32>
    %54 = arith.cmpi eq, %8, %53 : vector<8x32xi32>
    %55 = arith.ori %51, %54 : vector<8x32xi1>
    %cst_17 = arith.constant 1.000000e+00 : f32
    %cst_18 = arith.constant 0.000000e+00 : f32
    %56 = vector.broadcast %cst_17 : f32 to vector<8x32xf32>
    %57 = vector.broadcast %cst_18 : f32 to vector<8x32xf32>
    %58 = arith.select %55, %56, %57 : vector<8x32xi1>, vector<8x32xf32>
    %59 = arith.truncf %58 : vector<8x32xf32> to vector<8x32xbf16>
    %cst_19 = arith.constant dense<0.000000e+00> : vector<8x128xf32>
    %60 = tpu.matmul %59, %1, %cst_19 {dimension_numbers = #tpu.dot_dimension_numbers<[1], [0], [0], [1], [0, 0, 1, 1], [], []>} : vector<8x32xbf16>, vector<32x128xbf16>, vector<8x128xf32> -> vector<8x128xf32>
    %61 = arith.maximumf %48, %60 : vector<8x128xf32>
    %62 = vector.extract_strided_slice %3 {offsets = [0, 4], sizes = [8, 1], strides = [1, 1]} : vector<8x8xi32> to vector<8x1xi32>
    %63 = vector.broadcast %62 : vector<8x1xi32> to vector<8x32xi32>
    %64 = arith.cmpi eq, %8, %63 : vector<8x32xi32>
    %65 = vector.extract_strided_slice %7 {offsets = [0, 4], sizes = [8, 1], strides = [1, 1]} : vector<8x8xi32> to vector<8x1xi32>
    %66 = vector.broadcast %65 : vector<8x1xi32> to vector<8x32xi32>
    %67 = arith.cmpi eq, %8, %66 : vector<8x32xi32>
    %68 = arith.ori %64, %67 : vector<8x32xi1>
    %cst_20 = arith.constant 1.000000e+00 : f32
    %cst_21 = arith.constant 0.000000e+00 : f32
    %69 = vector.broadcast %cst_20 : f32 to vector<8x32xf32>
    %70 = vector.broadcast %cst_21 : f32 to vector<8x32xf32>
    %71 = arith.select %68, %69, %70 : vector<8x32xi1>, vector<8x32xf32>
    %72 = arith.truncf %71 : vector<8x32xf32> to vector<8x32xbf16>
    %cst_22 = arith.constant dense<0.000000e+00> : vector<8x128xf32>
    %73 = tpu.matmul %72, %1, %cst_22 {dimension_numbers = #tpu.dot_dimension_numbers<[1], [0], [0], [1], [0, 0, 1, 1], [], []>} : vector<8x32xbf16>, vector<32x128xbf16>, vector<8x128xf32> -> vector<8x128xf32>
    %74 = arith.maximumf %61, %73 : vector<8x128xf32>
    %75 = vector.extract_strided_slice %3 {offsets = [0, 5], sizes = [8, 1], strides = [1, 1]} : vector<8x8xi32> to vector<8x1xi32>
    %76 = vector.broadcast %75 : vector<8x1xi32> to vector<8x32xi32>
    %77 = arith.cmpi eq, %8, %76 : vector<8x32xi32>
    %78 = vector.extract_strided_slice %7 {offsets = [0, 5], sizes = [8, 1], strides = [1, 1]} : vector<8x8xi32> to vector<8x1xi32>
    %79 = vector.broadcast %78 : vector<8x1xi32> to vector<8x32xi32>
    %80 = arith.cmpi eq, %8, %79 : vector<8x32xi32>
    %81 = arith.ori %77, %80 : vector<8x32xi1>
    %cst_23 = arith.constant 1.000000e+00 : f32
    %cst_24 = arith.constant 0.000000e+00 : f32
    %82 = vector.broadcast %cst_23 : f32 to vector<8x32xf32>
    %83 = vector.broadcast %cst_24 : f32 to vector<8x32xf32>
    %84 = arith.select %81, %82, %83 : vector<8x32xi1>, vector<8x32xf32>
    %85 = arith.truncf %84 : vector<8x32xf32> to vector<8x32xbf16>
    %cst_25 = arith.constant dense<0.000000e+00> : vector<8x128xf32>
    %86 = tpu.matmul %85, %1, %cst_25 {dimension_numbers = #tpu.dot_dimension_numbers<[1], [0], [0], [1], [0, 0, 1, 1], [], []>} : vector<8x32xbf16>, vector<32x128xbf16>, vector<8x128xf32> -> vector<8x128xf32>
    %87 = arith.maximumf %74, %86 : vector<8x128xf32>
    %88 = vector.extract_strided_slice %3 {offsets = [0, 6], sizes = [8, 1], strides = [1, 1]} : vector<8x8xi32> to vector<8x1xi32>
    %89 = vector.broadcast %88 : vector<8x1xi32> to vector<8x32xi32>
    %90 = arith.cmpi eq, %8, %89 : vector<8x32xi32>
    %91 = vector.extract_strided_slice %7 {offsets = [0, 6], sizes = [8, 1], strides = [1, 1]} : vector<8x8xi32> to vector<8x1xi32>
    %92 = vector.broadcast %91 : vector<8x1xi32> to vector<8x32xi32>
    %93 = arith.cmpi eq, %8, %92 : vector<8x32xi32>
    %94 = arith.ori %90, %93 : vector<8x32xi1>
    %cst_26 = arith.constant 1.000000e+00 : f32
    %cst_27 = arith.constant 0.000000e+00 : f32
    %95 = vector.broadcast %cst_26 : f32 to vector<8x32xf32>
    %96 = vector.broadcast %cst_27 : f32 to vector<8x32xf32>
    %97 = arith.select %94, %95, %96 : vector<8x32xi1>, vector<8x32xf32>
    %98 = arith.truncf %97 : vector<8x32xf32> to vector<8x32xbf16>
    %cst_28 = arith.constant dense<0.000000e+00> : vector<8x128xf32>
    %99 = tpu.matmul %98, %1, %cst_28 {dimension_numbers = #tpu.dot_dimension_numbers<[1], [0], [0], [1], [0, 0, 1, 1], [], []>} : vector<8x32xbf16>, vector<32x128xbf16>, vector<8x128xf32> -> vector<8x128xf32>
    %100 = arith.maximumf %87, %99 : vector<8x128xf32>
    %101 = vector.extract_strided_slice %3 {offsets = [0, 7], sizes = [8, 1], strides = [1, 1]} : vector<8x8xi32> to vector<8x1xi32>
    %102 = vector.broadcast %101 : vector<8x1xi32> to vector<8x32xi32>
    %103 = arith.cmpi eq, %8, %102 : vector<8x32xi32>
    %104 = vector.extract_strided_slice %7 {offsets = [0, 7], sizes = [8, 1], strides = [1, 1]} : vector<8x8xi32> to vector<8x1xi32>
    %105 = vector.broadcast %104 : vector<8x1xi32> to vector<8x32xi32>
    %106 = arith.cmpi eq, %8, %105 : vector<8x32xi32>
    %107 = arith.ori %103, %106 : vector<8x32xi1>
    %cst_29 = arith.constant 1.000000e+00 : f32
    %cst_30 = arith.constant 0.000000e+00 : f32
    %108 = vector.broadcast %cst_29 : f32 to vector<8x32xf32>
    %109 = vector.broadcast %cst_30 : f32 to vector<8x32xf32>
    %110 = arith.select %107, %108, %109 : vector<8x32xi1>, vector<8x32xf32>
    %111 = arith.truncf %110 : vector<8x32xf32> to vector<8x32xbf16>
    %cst_31 = arith.constant dense<0.000000e+00> : vector<8x128xf32>
    %112 = tpu.matmul %111, %1, %cst_31 {dimension_numbers = #tpu.dot_dimension_numbers<[1], [0], [0], [1], [0, 0, 1, 1], [], []>} : vector<8x32xbf16>, vector<32x128xbf16>, vector<8x128xf32> -> vector<8x128xf32>
    %113 = arith.maximumf %100, %112 : vector<8x128xf32>
    %c0_32 = arith.constant 0 : index
    %c0_33 = arith.constant 0 : index
    %114 = vector.load %arg5[%c0_32, %c0_33] : memref<1x128xf32, #tpu.memory_space<vmem>>, vector<1x128xf32>
    %115 = vector.broadcast %114 : vector<1x128xf32> to vector<8x128xf32>
    %116 = arith.addf %113, %115 : vector<8x128xf32>
    %cst_34 = arith.constant 0.000000e+00 : f32
    %117 = vector.broadcast %cst_34 : f32 to vector<8x128xf32>
    %118 = arith.maximumf %116, %117 : vector<8x128xf32>
    %c0_35 = arith.constant 0 : index
    %c0_36 = arith.constant 0 : index
    %c0_37 = arith.constant 0 : index
    %119 = vector.load %arg6[%c0_35, %c0_36, %c0_37] : memref<1x8x128xf32, #tpu.memory_space<vmem>>, vector<1x8x128xf32>
    %120 = vector.shape_cast %119 : vector<1x8x128xf32> to vector<8x128xf32>
    %121 = vector.shape_cast %118 : vector<8x128xf32> to vector<1x8x128xf32>
    tpu.vector_store %arg6[%c0_35, %c0_36, %c0_37], %121 {strides = array<i32>} : memref<1x8x128xf32, #tpu.memory_space<vmem>>, vector<1x8x128xf32>,
    return
  }
  func.func @transform_0(%arg0: i32, %arg1: i32) -> (i32, i32, i32) {
    %c0_i32 = arith.constant 0 : i32
    %c0_i32_0 = arith.constant 0 : i32
    %c0_i32_1 = arith.constant 0 : i32
    return %arg0, %c0_i32, %c0_i32_0 : i32, i32, i32
  }
  func.func @transform_1(%arg0: i32, %arg1: i32) -> (i32, i32, i32) {
    %c0_i32 = arith.constant 0 : i32
    %c0_i32_0 = arith.constant 0 : i32
    return %arg0, %arg1, %c0_i32 : i32, i32, i32
  }
  func.func @transform_2(%arg0: i32, %arg1: i32) -> (i32, i32, i32) {
    %c0_i32 = arith.constant 0 : i32
    %c0_i32_0 = arith.constant 0 : i32
    return %arg0, %arg1, %c0_i32 : i32, i32, i32
  }
  func.func @transform_3(%arg0: i32, %arg1: i32) -> (i32, i32) {
    %c0_i32 = arith.constant 0 : i32
    %c0_i32_0 = arith.constant 0 : i32
    %c0_i32_1 = arith.constant 0 : i32
    return %c0_i32, %c0_i32_0 : i32, i32
  }
  func.func @transform_4(%arg0: i32, %arg1: i32) -> (i32, i32, i32) {
    %c0_i32 = arith.constant 0 : i32
    %c0_i32_0 = arith.constant 0 : i32
    return %arg0, %arg1, %c0_i32 : i32, i32, i32
  }
}

</mosaic_0001>

<bundles_post_ra>
// kernel: edge_conv2d.1
= control target key start
LH: loop header
LB: loop body
LE: loop exit
PB: predicated region body
PF: predicated region fallthrough
CT: control target
= control target key end

     0   :  { %s821_s15 = smov 0   ;;  %s823_s16 = smov 0   ;;  %s894_s0 = inlined_call_operand.vmem [shape: bf16[2,32,128], index: 0, kind: input, shape index: {}]   ;;  %s895_s1 = inlined_call_operand.vmem [shape: s32[2,16,8], index: 1, kind: input, shape index: {}]   ;;  %s896_s2 = inlined_call_operand.vmem [shape: s32[2,16,8], index: 2, kind: input, shape index: {}]   ;;  %s897_s3 = inlined_call_operand.vmem [shape: f32[1,128], index: 3, kind: input, shape index: {}]   ;;  %s898_s4 = inlined_call_operand.vmem [shape: f32[2,16,128], index: 4, kind: output, shape index: {}]  }
   0x1   :  { %s825_s17 = smov 0   ;;  %s827_s18 = smov 0  }
   0x2   :  { %s829_s19 = smov 0  }
   0x3 LB: > { %s23_s20 = sadd.s32 1, %s777_s17  ;;  %s26_s21 = sadd.s32 1, %s781_s18  ;;  %s785_s19 = sphi %s829_s19, %s14_s19   ;;  %s781_s18 = sphi %s827_s18, %s902_s18   ;;  %s777_s17 = sphi %s825_s17, %s901_s17   ;;  %s773_s16 = sphi %s823_s16, %s900_s16   ;;  %s769_s15 = sphi %s821_s15, %s899_s15  }
   0x4   : > { %p24_p0 = scmp.ge.s32.totalorder %s23_s20, 2  ;;  %p654_p1 = scmp.ge.s32.totalorder %s785_s19, 1 }
   0x5   : > { %p206_p2 = scmp.lt.s32.totalorder %s785_s19, 5 }
   0x6   : > { %s904_s20 = smov (%p24_p0, %s23_s20), 0  ;;  %s906_s21 = smov (!%p24_p0, %s26_s21), %s781_s18 }
   0x7   : > { %p207_p3 = pnand %p654_p1, %p206_p2  ;;  %p28_p4 = scmp.ge.s32.totalorder %s906_s21, 2 }
   0x8   : > { %p251_p5 = scmp.lt.s32.totalorder (!%p207_p3), %s773_s16, 1  ;;  %p258_p6 = scmp.lt.s32.totalorder (!%p207_p3), %s769_s15, 1 }
   0x9   : > { %s908_s21 = smov (%p28_p4, %s906_s21), 0  ;;  %210 = sbr.rel (%p207_p3) target bundleno = 321 (0x141), region = 36 }
   0xe   : > { %v787_v0 = vmov 3   ;;  %v788_v1 = vmov 2   ;;  %s910_s16 = smov (!%p251_p5, %s773_s16), 1  ;;  %v789_v2 = vmov 0   ;;  %s912_s15 = smov (!%p258_p6, %s769_s15), 1  ;;  %v790_v8 = vmov 1  }
   0xf   : > { %734 = vset.pattern.permute.xlu1 %v787_v0  ;;  %733 = vset.pattern.permute.xlu0 %v788_v1  ;;  %s657_s22 = sshll.u32 %s910_s16, 1  ;;  %s681_s23 = sshll.u32 %s910_s16, 4  ;;  %v791_v9 = vmov 6   ;;  %v792_v10 = vmov 7   ;;  %v793_v11 = vmov 4   ;;  %v794_v12 = vmov 5  }
  0x10   : > { %735 = vset.pattern.permute.xlu2 %v789_v2  ;;  %s261_s24 = sadd.s32 %s657_s22, %s912_s15  ;;  %s255_s27 = scalar_lea.vmem %s894_s0, %s681_s23  ;;  %v288_v13 = vlaneseq  ;;  %v795_v17 = vmov 0.0   ;;  %vm313_vm3 = vcmask 261120  }
  0x11   : > { %s854_s28 = sshll.u32 %s261_s24, 3  ;;  %v683_v3 = vld [vmem:[%s255_s27 + $0x8] sm:$0xff]  ;;  %v682_v5 = vld [vmem:[%s255_s27] sm:$0xff] }
  0x12   : > { %s263_s5 = scalar_lea.vmem %s895_s1, %s854_s28  ;;  %s271_s8 = scalar_lea.vmem %s896_s2, %s854_s28  ;;  %323 = vmatpush.bf16.msra.mxu0 %v683_v3  ;;  %379 = vmatpush.bf16.msra.mxu2 %v683_v3  ;;  %v289_v15 = vand.u32 127, %v288_v13 }
  0x13   : > { %v285_v4 = vld [vmem:[%s263_s5] sm:$0xff]  ;;  %407 = vmatpush.bf16.msra.mxu3 %v683_v3  ;;  %351 = vmatpush.bf16.msra.mxu1 %v683_v3  ;;  %s279_s13 = scalar_lea.vmem %s898_s4, %s854_s28 }
  0x14   : > { %388 = vperm.xlu1 %734, %v285_v4   ;;  %360 = vperm.xlu0 %733, %v285_v4   ;;  %v286_v6 = vld [vmem:[%s271_s8] sm:$0xff] }
  0x15   : > { %291 = vperm.xlu2 %735, %v285_v4   ;;  %v287_v7 = vadd.s32 16, %v286_v6  ;;  %v746_v6 = vld [vmem:[%s897_s3] ss:$0 sm:$0xff] }
  0x16   : > { %324 = vmatpush.bf16.msra.mxu0 %v682_v5  ;;  %380 = vmatpush.bf16.msra.mxu2 %v682_v5 }
  0x17   : > { %408 = vmatpush.bf16.msra.mxu3 %v682_v5  ;;  %352 = vmatpush.bf16.msra.mxu1 %v682_v5 }
  0x1a   : > { %491 = vmatpush.bf16.msrb.mxu2 %v683_v3  ;;  %435 = vmatpush.bf16.msrb.mxu0 %v683_v3 }
  0x1b   : > { %519 = vmatpush.bf16.msrb.mxu3 %v683_v3  ;;  %463 = vmatpush.bf16.msrb.mxu1 %v683_v3 }
  0x1c   : > { %392 = vperm.xlu1 %734, %v287_v7   ;;  %364 = vperm.xlu0 %733, %v287_v7  }
  0x1d   : > { %295 = vperm.xlu2 %735, %v287_v7  }
  0x1e   : > { %492 = vmatpush.bf16.msrb.mxu2 %v682_v5  ;;  %436 = vmatpush.bf16.msrb.mxu0 %v682_v5 }
  0x1f   : > { %520 = vmatpush.bf16.msrb.mxu3 %v682_v5  ;;  %464 = vmatpush.bf16.msrb.mxu1 %v682_v5 }
  0x24   : > { %737 = vset.pattern.permute.xlu1 %v790_v8  ;;  %736 = vset.pattern.permute.xlu0 %v790_v8 }
  0x25   : > { %336 = vperm.xlu1 %737, %v287_v7   ;;  %332 = vperm.xlu0 %736, %v285_v4  }
  0x26   : > { %738 = vset.pattern.permute.xlu2 %v791_v9 }
  0x27   : > { %472 = vperm.xlu2 %738, %v285_v4  }
  0x2d   : > { %739 = vset.pattern.permute.xlu1 %v791_v9  ;;  %741 = vset.pattern.permute.xlu0 %v792_v10 }
  0x2e   : > { %476 = vperm.xlu1 %739, %v287_v7   ;;  %504 = vperm.xlu0 %741, %v287_v7  }
  0x2f   : > { %740 = vset.pattern.permute.xlu2 %v792_v10 }
  0x30   : > { %500 = vperm.xlu2 %740, %v285_v4  }
  0x36   : > { %742 = vset.pattern.permute.xlu1 %v793_v11 }
  0x37   : > { %416 = vperm.xlu1 %742, %v285_v4  }
  0x38   : > { %743 = vset.pattern.permute.xlu2 %v793_v11 }
  0x39   : > { %420 = vperm.xlu2 %743, %v287_v7  }
  0x3f   : > { %744 = vset.pattern.permute.xlu1 %v794_v12 }
  0x40   : > { %444 = vperm.xlu1 %744, %v285_v4  }
  0x41   : > { %745 = vset.pattern.permute.xlu2 %v794_v12 }
  0x42   : > { %448 = vperm.xlu2 %745, %v287_v7  }
  0x6f   : > { %v292_v14 = vpop.permute.xlu2 %291 }
  0x70   : > { %vm293_vm0 = vcmp.eq.s32.totalorder %v289_v15, %v292_v14 }
  0x77   : > { %v296_v16 = vpop.permute.xlu2 %295 }
  0x78   : > { %vm297_vm1 = vcmp.eq.s32.totalorder %v289_v15, %v296_v16 }
  0x79   : > { %vm298_vm2 = vmor %vm293_vm0, %vm297_vm1 }
  0x7a   : > { %v299_v18 = vsel %vm298_vm2, 1.0, %v795_v17 }
  0x7b   : > { %v300_v19 = vpack.c.bf16 %v299_v18, %v299_v18 }
  0x7d   : > { %671 = vmatmul.msk.bf16.vlgmr.msra.gmra.mxu0 %vm313_vm3, %v300_v19 }
  0x81   : > { %v473_v24 = vpop.permute.xlu2 %472 }
  0x82   : > { %vm474_vm14 = vcmp.eq.s32.totalorder %v289_v15, %v473_v24 }
  0x86   : > { %v389_v20 = vpop.permute.xlu1 %388  ;;  %v361_v21 = vpop.permute.xlu0 %360 }
  0x87   : > { %vm362_vm4 = vcmp.eq.s32.totalorder %v289_v15, %v361_v21  ;;  %vm390_vm5 = vcmp.eq.s32.totalorder %v289_v15, %v389_v20 }
  0x8a   : > { %v501_v32 = vpop.permute.xlu2 %500 }
  0x8b   : > { %vm502_vm13 = vcmp.eq.s32.totalorder %v289_v15, %v501_v32 }
  0x8e   : > { %v393_v22 = vpop.permute.xlu1 %392  ;;  %v365_v23 = vpop.permute.xlu0 %364 }
  0x8f   : > { %vm394_vm6 = vcmp.eq.s32.totalorder %v289_v15, %v393_v22  ;;  %vm366_vm7 = vcmp.eq.s32.totalorder %v289_v15, %v365_v23 }
  0x90   : > { %vm395_vm8 = vmor %vm390_vm5, %vm394_vm6 }
  0x91   : > { %v396_v25 = vsel %vm395_vm8, 1.0, %v795_v17  ;;  %vm367_vm9 = vmor %vm362_vm4, %vm366_vm7 }
  0x92   : > { %v397_v26 = vpack.c.bf16 %v396_v25, %v396_v25  ;;  %v368_v27 = vsel %vm367_vm9, 1.0, %v795_v17 }
  0x93   : > { %v369_v28 = vpack.c.bf16 %v368_v27, %v368_v27  ;;  %v421_v39 = vpop.permute.xlu2 %420 }
  0x94   : > { %674 = vmatmul.msk.bf16.vlgmr.msra.gmra.mxu3 %vm313_vm3, %v397_v26  ;;  %vm422_vm4 = vcmp.eq.s32.totalorder %v289_v15, %v421_v39 }
  0x95   : > { %673 = vmatmul.msk.bf16.vlgmr.msra.gmra.mxu2 %vm313_vm3, %v369_v28 }
  0x97   : > { %v337_v29 = vpop.permute.xlu1 %336  ;;  %v333_v30 = vpop.permute.xlu0 %332 }
  0x98   : > { %vm338_vm10 = vcmp.eq.s32.totalorder %v289_v15, %v337_v29  ;;  %vm334_vm11 = vcmp.eq.s32.totalorder %v289_v15, %v333_v30 }
  0x99   : > { %vm339_vm12 = vmor %vm334_vm11, %vm338_vm10 }
  0x9a   : > { %v340_v31 = vsel %vm339_vm12, 1.0, %v795_v17 }
  0x9b   : > { %v341_v33 = vpack.c.bf16 %v340_v31, %v340_v31 }
  0x9c   : > { %v449_v44 = vpop.permute.xlu2 %448 }
  0x9d   : > { %672 = vmatmul.msk.bf16.vlgmr.msra.gmra.mxu1 %vm313_vm3, %v341_v33  ;;  %vm450_vm7 = vcmp.eq.s32.totalorder %v289_v15, %v449_v44 }
  0xa0   : > { %v477_v34 = vpop.permute.xlu1 %476  ;;  %v505_v35 = vpop.permute.xlu0 %504 }
  0xa1   : > { %vm478_vm15 = vcmp.eq.s32.totalorder %v289_v15, %v477_v34  ;;  %vm506_vm0 = vcmp.eq.s32.totalorder %v289_v15, %v505_v35 }
  0xa2   : > { %vm479_vm1 = vmor %vm474_vm14, %vm478_vm15 }
  0xa3   : > { %v480_v36 = vsel %vm479_vm1, 1.0, %v795_v17  ;;  %vm507_vm2 = vmor %vm502_vm13, %vm506_vm0 }
  0xa4   : > { %v481_v37 = vpack.c.bf16 %v480_v36, %v480_v36  ;;  %v508_v38 = vsel %vm507_vm2, 1.0, %v795_v17 }
  0xa5   : > { %v509_v40 = vpack.c.bf16 %v508_v38, %v508_v38 }
  0xa6   : > { %677 = vmatmul.msk.bf16.vlgmr.msrb.gmra.mxu2 %vm313_vm3, %v481_v37 }
  0xa7   : > { %678 = vmatmul.msk.bf16.vlgmr.msrb.gmra.mxu3 %vm313_vm3, %v509_v40 }
  0xa9   : > { %v417_v41 = vpop.permute.xlu1 %416 }
  0xaa   : > { %vm418_vm5 = vcmp.eq.s32.totalorder %v289_v15, %v417_v41 }
  0xab   : > { %vm423_vm6 = vmor %vm418_vm5, %vm422_vm4 }
  0xac   : > { %v424_v42 = vsel %vm423_vm6, 1.0, %v795_v17 }
  0xad   : > { %v425_v43 = vpack.c.bf16 %v424_v42, %v424_v42 }
  0xaf   : > { %675 = vmatmul.msk.bf16.vlgmr.msrb.gmra.mxu0 %vm313_vm3, %v425_v43 }
  0xb2   : > { %v445_v45 = vpop.permute.xlu1 %444 }
  0xb3   : > { %vm446_vm8 = vcmp.eq.s32.totalorder %v289_v15, %v445_v45 }
  0xb4   : > { %vm451_vm9 = vmor %vm446_vm8, %vm450_vm7 }
  0xb5   : > { %v452_v46 = vsel %vm451_vm9, 1.0, %v795_v17 }
  0xb6   : > { %v453_v47 = vpack.c.bf16 %v452_v46, %v452_v46 }
  0xb8   : > { %676 = vmatmul.msk.bf16.vlgmr.msrb.gmra.mxu1 %vm313_vm3, %v453_v47 }
  0xfa   : > { %v326_v48 = vpop.f32.mrf.mxu0 }
  0xfb   : > { %v330_v56 = vmax.f32 %v326_v48, -3.4028235e+38 }
 0x102   : > { %v328_v49 = vpop.f32.mrf.mxu0 }
 0x117   : > { %v410_v50 = vpop.f32.mrf.mxu3 }
 0x118   : > { %v382_v51 = vpop.f32.mrf.mxu2 }
 0x11a   : > { %v354_v52 = vpop.f32.mrf.mxu1 }
 0x11b   : > { %v358_v58 = vmax.f32 %v330_v56, %v354_v52 }
 0x11d   : > { %v386_v61 = vmax.f32 %v358_v58, %v382_v51 }
 0x11f   : > { %v412_v53 = vpop.f32.mrf.mxu3  ;;  %v414_v63 = vmax.f32 %v386_v61, %v410_v50 }
 0x120   : > { %v384_v54 = vpop.f32.mrf.mxu2 }
 0x122   : > { %v356_v55 = vpop.f32.mrf.mxu1 }
 0x129   : > { %v494_v57 = vpop.f32.mrf.mxu2 }
 0x12a   : > { %v522_v59 = vpop.f32.mrf.mxu3 }
 0x12c   : > { %v438_v60 = vpop.f32.mrf.mxu0 }
 0x12d   : > { %v442_v1 = vmax.f32 %v414_v63, %v438_v60 }
 0x131   : > { %v496_v62 = vpop.f32.mrf.mxu2 }
 0x132   : > { %v524_v0 = vpop.f32.mrf.mxu3 }
 0x134   : > { %v440_v2 = vpop.f32.mrf.mxu0 }
 0x135   : > { %v466_v3 = vpop.f32.mrf.mxu1 }
 0x136   : > { %v470_v4 = vmax.f32 %v442_v1, %v466_v3 }
 0x138   : > { %v498_v5 = vmax.f32 %v470_v4, %v494_v57 }
 0x13a   : > { %v526_v7 = vmax.f32 %v498_v5, %v522_v59 }
 0x13c   : > { %v531_v8 = vadd.f32 %v746_v6, %v526_v7 }
 0x13d   : > { %v468_v9 = vpop.f32.mrf.mxu1 }
 0x13e   : > { %v532_v10 = vmax.f32 %v531_v8, 0.0 }
 0x140   : > { %533 = vst [vmem:[%s279_s13] sm:$0xff] %v532_v10 }
 0x141 PF: > { %s14_s19 = sadd.s32 1, %s785_s19   ;;  %s899_s15 = smov %s777_s17 }
 0x142   : > { %p11_p7 = scmp.ge.s32.totalorder %s14_s19, 6   ;;  %s900_s16 = smov %s781_s18 }
 0x143   : > { %s901_s17 = smov %s904_s20  ;;  %s902_s18 = smov %s908_s21 }
 0x144   :  { %13 = sbr.rel (!%p11_p7) target bundleno = 3 (0x3), region = 72 }

</bundles_post_ra>
